<compile_context>
chip_gen: v5e
topology: v5e:2x2
jax: 0.10.0
libtpu: 0.0.40
codegen_flags: <defaults>
</compile_context>

<pallas_src>
import functools

import jax
import jax.numpy as jnp
from jax.experimental import pallas as pl
from jax.experimental.pallas import tpu as pltpu

HIDDEN = 10          # nn.Linear(in_feature, 10)
_MAX_TILE_B = 512    # rows per grid step; double-buffered tiles stay tiny vs VMEM
                     # even on v7x (64 MiB physical / 32 MiB default scoped limit).


def _round_up(n, m):
    return ((n + m - 1) // m) * m


def _tile_b_for(batch):
    # Multiple of 8 sublanes, capped at _MAX_TILE_B.
    return min(_MAX_TILE_B, _round_up(batch, 8))


def _mlp_core(x_ref, w1_ref, b1_ref, w2_ref, b2_ref):
    """x @ W1 + b1 -> sigmoid -> @ W2 + b2 (f32 accumulation on the MXU)."""
    x = x_ref[...].astype(jnp.float32)
    h = jnp.dot(x, w1_ref[...], preferred_element_type=jnp.float32) + b1_ref[...]
    h = jax.nn.sigmoid(h)  # exp on the EUP instead of a full-precision VPU divide chain
    logits = jnp.dot(h, w2_ref[...], preferred_element_type=jnp.float32) + b2_ref[...]
    return logits


def mlp_kernel(x_ref, w1_ref, b1_ref, w2_ref, b2_ref, logits_ref):
    logits_ref[...] = _mlp_core(x_ref, w1_ref, b1_ref, w2_ref, b2_ref)


def mlp_loss_kernel(x_ref, w1_ref, b1_ref, w2_ref, b2_ref, lbl_ref,
                    logits_ref, loss_ref, acc_ref, *, true_b):
    i = pl.program_id(0)
    tile_b = x_ref.shape[0]

    logits = _mlp_core(x_ref, w1_ref, b1_ref, w2_ref, b2_ref)
    logits_ref[...] = logits

    # Per-tile CrossEntropyLoss partial sum:
    #   sum_i( logsumexp(logits_i) - logits_i[y_i] ), masking batch-padding rows.
    m = jnp.max(logits, axis=-1, keepdims=True)                                   # (tb,1)
    lse = m + jnp.log(jnp.sum(jnp.exp(logits - m), axis=-1, keepdims=True))       # (tb,1)
    labels = lbl_ref[...]                                                         # (tb,1)
    col = jax.lax.broadcasted_iota(jnp.int32, logits.shape, 1)                    # (tb,C)
    picked = jnp.sum(jnp.where(col == labels, logits, 0.0),
                     axis=-1, keepdims=True)                                      # (tb,1)
    row = jax.lax.broadcasted_iota(jnp.int32, (tile_b, 1), 0) + i * tile_b
    valid = row < true_b                                                          # mask padding
    tile_sum = jnp.sum(jnp.where(valid, lse - picked, 0.0), keepdims=True)        # (1,1)

    @pl.when(i == 0)
    def _():
        acc_ref[...] = jnp.zeros_like(acc_ref)

    acc_ref[...] += tile_sum

    @pl.when(i == pl.num_programs(0) - 1)
    def _():
        # Mean over the TRUE batch size (not the padded one).
        loss_ref[...] = acc_ref[...] * (1.0 / true_b)


def _weight_specs(in_feature, class_num):
    # Weights / biases stay VMEM-resident across all batch tiles.
    return [
        pl.BlockSpec((in_feature, HIDDEN), lambda i: (0, 0)),
        pl.BlockSpec((1, HIDDEN), lambda i: (0, 0)),
        pl.BlockSpec((HIDDEN, class_num), lambda i: (0, 0)),
        pl.BlockSpec((1, class_num), lambda i: (0, 0)),
    ]


@jax.jit
def model_forward(x, w1_t, b1, w2_t, b2):
    """label=None branch of Model.forward: returns logits [B, C]."""
    B, F = x.shape
    C = w2_t.shape[1]
    tile_b = _tile_b_for(B)
    b_pad = _round_up(B, tile_b)
    x_p = jnp.pad(x, ((0, b_pad - B), (0, 0))) if b_pad != B else x

    logits = pl.pallas_call(
        mlp_kernel,
        out_shape=jax.ShapeDtypeStruct((b_pad, C), jnp.float32),
        grid=(b_pad // tile_b,),
        in_specs=[pl.BlockSpec((tile_b, F), lambda i: (i, 0))] + _weight_specs(F, C),
        out_specs=pl.BlockSpec((tile_b, C), lambda i: (i, 0)),
        compiler_params=pltpu.CompilerParams(
            dimension_semantics=("parallel",)),   # megacore sharding on v7x
    )(x_p, w1_t, b1, w2_t, b2)
    return logits[:B]


@jax.jit
def model_forward_with_loss(x, w1_t, b1, w2_t, b2, labels):
    """label is not None branch: returns (logits [B, C], scalar CE loss)."""
    B, F = x.shape
    C = w2_t.shape[1]
    tile_b = _tile_b_for(B)
    b_pad = _round_up(B, tile_b)
    x_p = jnp.pad(x, ((0, b_pad - B), (0, 0))) if b_pad != B else x
    lbl = labels.astype(jnp.int32).reshape(B, 1)
    lbl_p = jnp.pad(lbl, ((0, b_pad - B), (0, 0))) if b_pad != B else lbl

    logits, loss = pl.pallas_call(
        functools.partial(mlp_loss_kernel, true_b=B),
        out_shape=(
            jax.ShapeDtypeStruct((b_pad, C), jnp.float32),
            jax.ShapeDtypeStruct((1, 1), jnp.float32),
        ),
        grid=(b_pad // tile_b,),
        in_specs=[pl.BlockSpec((tile_b, F), lambda i: (i, 0))]
        + _weight_specs(F, C)
        + [pl.BlockSpec((tile_b, 1), lambda i: (i, 0))],
        out_specs=(
            pl.BlockSpec((tile_b, C), lambda i: (i, 0)),
            pl.BlockSpec((1, 1), lambda i: (0, 0)),   # resident accumulator output
        ),
        scratch_shapes=[pltpu.VMEM((1, 1), jnp.float32)],
        compiler_params=pltpu.CompilerParams(
            dimension_semantics=("arbitrary",)),  # loss accumulates across batch tiles
    )(x_p, w1_t, b1, w2_t, b2, lbl_p)
    return logits[:B], loss[0, 0]


def init_params(key, in_feature, class_num):
    """Deterministic init mimicking nn.Linear default (U[-1/sqrt(fan_in), +])."""
    k1, k2, k3, k4 = jax.random.split(key, 4)
    bound1 = 1.0 / jnp.sqrt(in_feature)
    bound2 = 1.0 / jnp.sqrt(HIDDEN)
    # Stored pre-transposed relative to PyTorch's (out, in) layout.
    w1_t = jax.random.uniform(k1, (in_feature, HIDDEN), jnp.float32, -bound1, bound1)
    b1 = jax.random.uniform(k2, (1, HIDDEN), jnp.float32, -bound1, bound1)
    w2_t = jax.random.uniform(k3, (HIDDEN, class_num), jnp.float32, -bound2, bound2)
    b2 = jax.random.uniform(k4, (1, class_num), jnp.float32, -bound2, bound2)
    return w1_t, b1, w2_t, b2


if __name__ == "__main__":
    B, IN_FEATURE, CLASS_NUM = 8, 32, 4

    key = jax.random.PRNGKey(0)
    kx, kl, kp = jax.random.split(key, 3)

    x = jax.random.normal(kx, (B, IN_FEATURE), jnp.float32)
    labels = jax.random.randint(kl, (B,), 0, CLASS_NUM, jnp.int32)
    w1_t, b1, w2_t, b2 = init_params(kp, IN_FEATURE, CLASS_NUM)

    # label=None branch
    logits = model_forward(x, w1_t, b1, w2_t, b2)
    jax.block_until_ready(logits)

    # label provided branch: (logits, loss)
    logits2, loss = model_forward_with_loss(x, w1_t, b1, w2_t, b2, labels)
    jax.block_until_ready((logits2, loss))

    # Sanity check against plain JAX reference.
    h_ref = jax.nn.sigmoid(x @ w1_t + b1)
    logits_ref = h_ref @ w2_t + b2
    lse = jax.scipy.special.logsumexp(logits_ref, axis=-1)
    loss_ref = jnp.mean(lse - logits_ref[jnp.arange(B), labels])
    assert jnp.allclose(logits, logits_ref, atol=1e-5, rtol=1e-5)
    assert jnp.allclose(logits2, logits_ref, atol=1e-5, rtol=1e-5)
    assert jnp.allclose(loss, loss_ref, atol=1e-5, rtol=1e-5)

    # Also exercise the padding/masking path (batch not a multiple of 8).
    B2 = 20
    x2 = jax.random.normal(kx, (B2, IN_FEATURE), jnp.float32)
    labels2 = jax.random.randint(kl, (B2,), 0, CLASS_NUM, jnp.int32)
    lg2, ls2 = model_forward_with_loss(x2, w1_t, b1, w2_t, b2, labels2)
    jax.block_until_ready((lg2, ls2))
    h2 = jax.nn.sigmoid(x2 @ w1_t + b1)
    lr2 = h2 @ w2_t + b2
    lse2 = jax.scipy.special.logsumexp(lr2, axis=-1)
    lref2 = jnp.mean(lse2 - lr2[jnp.arange(B2), labels2])
    assert jnp.allclose(lg2, lr2, atol=1e-5, rtol=1e-5)
    assert jnp.allclose(ls2, lref2, atol=1e-5, rtol=1e-5)

    print("KERNEL_OK")
</pallas_src>

<mosaic_0001>
module attributes {stable_mosaic.version = 11 : i64} {
  func.func @mlp_kernel(%arg0: i32, %arg1: memref<8x32xf32, #tpu.memory_space<vmem>>, %arg2: memref<32x10xf32, #tpu.memory_space<vmem>>, %arg3: memref<1x10xf32, #tpu.memory_space<vmem>>, %arg4: memref<10x4xf32, #tpu.memory_space<vmem>>, %arg5: memref<1x4xf32, #tpu.memory_space<vmem>>, %arg6: memref<8x4xf32, #tpu.memory_space<vmem>>) attributes {dimension_semantics = [#tpu.dimension_semantics<parallel>], iteration_bounds = array<i64: 1>, scalar_prefetch = 0 : i64, scratch_operands = 0 : i64, tpu.core_type = #tpu.core_type<tc>, window_params = [{transform_indices = @transform_0, window_bounds = array<i64: 8, 32>}, {pipeline_mode = #tpu.pipeline_mode<synchronous>, transform_indices = @transform_1, window_bounds = array<i64: 32, 10>}, {pipeline_mode = #tpu.pipeline_mode<synchronous>, transform_indices = @transform_2, window_bounds = array<i64: 1, 10>}, {pipeline_mode = #tpu.pipeline_mode<synchronous>, transform_indices = @transform_3, window_bounds = array<i64: 10, 4>}, {pipeline_mode = #tpu.pipeline_mode<synchronous>, transform_indices = @transform_4, window_bounds = array<i64: 1, 4>}, {transform_indices = @transform_5, window_bounds = array<i64: 8, 4>}]} {
    %c0 = arith.constant 0 : index
    %c0_0 = arith.constant 0 : index
    %0 = vector.load %arg1[%c0, %c0_0] : memref<8x32xf32, #tpu.memory_space<vmem>>, vector<8x32xf32>
    %c0_1 = arith.constant 0 : index
    %c0_2 = arith.constant 0 : index
    %1 = vector.load %arg2[%c0_1, %c0_2] : memref<32x10xf32, #tpu.memory_space<vmem>>, vector<32x10xf32>
    %cst = arith.constant dense<0.000000e+00> : vector<8x10xf32>
    %2 = tpu.matmul %0, %1, %cst {dimension_numbers = #tpu.dot_dimension_numbers<[1], [0], [0], [1], [0, 0, 1, 1], [], []>} : vector<8x32xf32>, vector<32x10xf32>, vector<8x10xf32> -> vector<8x10xf32>
    %c0_3 = arith.constant 0 : index
    %c0_4 = arith.constant 0 : index
    %3 = vector.load %arg3[%c0_3, %c0_4] : memref<1x10xf32, #tpu.memory_space<vmem>>, vector<1x10xf32>
    %4 = vector.broadcast %3 : vector<1x10xf32> to vector<8x10xf32>
    %5 = arith.addf %2, %4 : vector<8x10xf32>
    %6 = arith.negf %5 : vector<8x10xf32>
    %7 = math.exp %6 : vector<8x10xf32>
    %cst_5 = arith.constant 1.000000e+00 : f32
    %8 = vector.broadcast %cst_5 : f32 to vector<8x10xf32>
    %9 = arith.addf %8, %7 : vector<8x10xf32>
    %10 = arith.divf %8, %9 : vector<8x10xf32>
    %c0_6 = arith.constant 0 : index
    %c0_7 = arith.constant 0 : index
    %11 = vector.load %arg4[%c0_6, %c0_7] : memref<10x4xf32, #tpu.memory_space<vmem>>, vector<10x4xf32>
    %cst_8 = arith.constant dense<0.000000e+00> : vector<8x4xf32>
    %12 = tpu.matmul %10, %11, %cst_8 {dimension_numbers = #tpu.dot_dimension_numbers<[1], [0], [0], [1], [0, 0, 1, 1], [], []>} : vector<8x10xf32>, vector<10x4xf32>, vector<8x4xf32> -> vector<8x4xf32>
    %c0_9 = arith.constant 0 : index
    %c0_10 = arith.constant 0 : index
    %13 = vector.load %arg5[%c0_9, %c0_10] : memref<1x4xf32, #tpu.memory_space<vmem>>, vector<1x4xf32>
    %14 = vector.broadcast %13 : vector<1x4xf32> to vector<8x4xf32>
    %15 = arith.addf %12, %14 : vector<8x4xf32>
    %c0_11 = arith.constant 0 : index
    %c0_12 = arith.constant 0 : index
    %16 = vector.load %arg6[%c0_11, %c0_12] : memref<8x4xf32, #tpu.memory_space<vmem>>, vector<8x4xf32>
    tpu.vector_store %arg6[%c0_11, %c0_12], %15 {strides = array<i32>} : memref<8x4xf32, #tpu.memory_space<vmem>>, vector<8x4xf32>,
    return
  }
  func.func @transform_0(%arg0: i32) -> (i32, i32) {
    %c0_i32 = arith.constant 0 : i32
    %c0_i32_0 = arith.constant 0 : i32
    return %arg0, %c0_i32 : i32, i32
  }
  func.func @transform_1(%arg0: i32) -> (i32, i32) {
    %c0_i32 = arith.constant 0 : i32
    %c0_i32_0 = arith.constant 0 : i32
    %c0_i32_1 = arith.constant 0 : i32
    return %c0_i32, %c0_i32_0 : i32, i32
  }
  func.func @transform_2(%arg0: i32) -> (i32, i32) {
    %c0_i32 = arith.constant 0 : i32
    %c0_i32_0 = arith.constant 0 : i32
    %c0_i32_1 = arith.constant 0 : i32
    return %c0_i32, %c0_i32_0 : i32, i32
  }
  func.func @transform_3(%arg0: i32) -> (i32, i32) {
    %c0_i32 = arith.constant 0 : i32
    %c0_i32_0 = arith.constant 0 : i32
    %c0_i32_1 = arith.constant 0 : i32
    return %c0_i32, %c0_i32_0 : i32, i32
  }
  func.func @transform_4(%arg0: i32) -> (i32, i32) {
    %c0_i32 = arith.constant 0 : i32
    %c0_i32_0 = arith.constant 0 : i32
    %c0_i32_1 = arith.constant 0 : i32
    return %c0_i32, %c0_i32_0 : i32, i32
  }
  func.func @transform_5(%arg0: i32) -> (i32, i32) {
    %c0_i32 = arith.constant 0 : i32
    %c0_i32_0 = arith.constant 0 : i32
    return %arg0, %c0_i32 : i32, i32
  }
}

</mosaic_0001>

<bundles_post_ra>
// kernel: model_forward.1
= control target key start
LH: loop header
LB: loop body
LE: loop exit
PB: predicated region body
PF: predicated region fallthrough
CT: control target
= control target key end

     0   :  { %vm29_vm0 = vcmask 261120   ;;  %vm82_vm1 = vcmask 1041408   ;;  %vm78_vm5 = vcmask 80896   ;;  %vm106_vm7 = vcmask 31744   ;;  %s182_s1 = inlined_call_operand.vmem [shape: f32[32,10], index: 1, kind: input, shape index: {}]   ;;  %s183_s2 = inlined_call_operand.vmem [shape: f32[1,10], index: 2, kind: input, shape index: {}]   ;;  %s184_s0 = inlined_call_operand.vmem [shape: f32[8,32], index: 0, kind: input, shape index: {}]   ;;  %s185_s4 = inlined_call_operand.vmem [shape: f32[1,4], index: 4, kind: input, shape index: {}]   ;;  %s186_s3 = inlined_call_operand.vmem [shape: f32[10,4], index: 3, kind: input, shape index: {}]   ;;  %s187_s5 = inlined_call_operand.vmem [shape: f32[8,4], index: 5, kind: output, shape index: {}]  }
   0x1   :  { %v24_v0 = vld [vmem:[%s182_s1 + $0x18] sm:$0xff]  ;;  %v23_v1 = vld [vmem:[%s182_s1 + $0x10] sm:$0xff]  ;;  %v22_v2 = vld [vmem:[%s182_s1 + $0x8] sm:$0xff] }
   0x2   :  { %45 = vmatpush.msra.mxu0 %v24_v0  ;;  %v21_v3 = vld [vmem:[%s182_s1] sm:$0xff]  ;;  %v73_v5 = vld [vmem:[%s186_s3 + $0x8] sm:$0x3] }
   0x3   :  { %v20_v4 = vld [vmem:[%s184_s0] sm:$0xff]  ;;  %114 = vmatpush.msk.msra.mxu1 %vm82_vm1, %v73_v5 }
   0x4   :  { %46 = vmatpush.msra.mxu0 %v23_v1  ;;  %v72_v6 = vld [vmem:[%s186_s3] sm:$0xff] }
   0x5   :  { %101 = vmatpush.msra.mxu1 %v72_v6  ;;  %v116_v7 = vld [vmem:[%s183_s2] ss:$0 sm:$0xff] }
   0x6   :  { %47 = vmatpush.msra.mxu0 %v22_v2  ;;  %v117_v23 = vld [vmem:[%s185_s4] ss:$0 sm:$0xff] }
   0x8   :  { %48 = vmatpush.msra.mxu0 %v21_v3 }
   0x9   :  { %112 = vmatmul.msk.f32.vlgmr.msra.gmra.mxu0 %vm29_vm0, %v20_v4 }
  0x86   :  { %v50_v8 = vpop.f32.mrf.mxu0 }
  0x87   :  { %v51_v9 = vadd.f32 %v116_v7, %v50_v8 }
  0x89   :  { %v113_v10 = vmul.f32 -1.442695, %v51_v9 }
  0x8b   :  { %118 = vpow2.f32 %v113_v10 }
  0x91   :  { %v119_v11 = vpop.eup %118 }
  0x92   :  { %v56_v12 = vadd.f32 1.0, %v119_v11 }
  0x94   :  { %120 = vrcp.f32 %v56_v12  ;;  %v68_v16 = vand.u32 2147483648, %v56_v12  ;;  %v66_v18 = vand.u32 2147483647, %v56_v12  ;;  %vm62_vm3 = vweird.f32 %v56_v12 }
  0x96   :  { %v69_v20 = vor.u32 1.1754944e-38, %v68_v16  ;;  %vm67_vm6 = vcmp.eq.f32.partialorder %v66_v18, 8.507059e+37 }
  0x9a   :  { %v121_v13 = vpop.eup %120 }
  0x9b   :  { %v58_v14 = vmul.f32 %v121_v13, %v56_v12  ;;  %vm63_vm2 = vweird.f32 %v121_v13 }
  0x9c   :  { %vm64_vm4 = vmor %vm62_vm3, %vm63_vm2 }
  0x9d   :  { %v59_v15 = vsub.f32 1.0, %v58_v14 }
  0x9f   :  { %v60_v17 = vmul.f32 %v121_v13, %v59_v15 }
  0xa1   :  { %v61_v19 = vadd.f32 %v121_v13, %v60_v17 }
  0xa3   :  { %v65_v21 = vsel %vm64_vm4, %v121_v13, %v61_v19 }
  0xa4   :  { %v70_v22 = vsel %vm67_vm6, %v69_v20, %v65_v21 }
  0xa5   :  { %115 = vmatmul.msk.f32.vlgmr.msra.gmra.mxu1 %vm78_vm5, %v70_v22 }
 0x122   :  { %v103_v24 = vpop.f32.mrf.mxu1 }
 0x123   :  { %v104_v25 = vadd.f32 %v117_v23, %v103_v24 }
 0x125   :  { %107 = vst.msk [vmem:[%s187_s5] sm:$0xff] %vm106_vm7, %v104_v25 }

</bundles_post_ra>
